<compile_context>
chip_gen: v6e
topology: v6e:2x2x1
jax: 0.10.0
libtpu: 0.0.40
codegen_flags: <defaults>
</compile_context>

<pallas_src>
import jax
import jax.numpy as jnp
from jax.experimental import pallas as pl
from jax.experimental.pallas import tpu as pltpu

# ----------------------- small EEGNet configuration -----------------------
N_BATCH = 2          # batch
CHANS = 8            # EEG channels (PyTorch H axis)
SAMPLES = 64         # time samples (PyTorch W axis)
KERN = 16            # kernLength of block1 temporal conv
F1 = 4               # temporal filters
DMULT = 2            # depth multiplier D
F1D = F1 * DMULT
F2 = 8               # pointwise/separable filters
K2 = 8               # block2 temporal kernel (1, 8)
NB_CLASSES = 4
EPS = 1e-5           # BatchNorm eps

NC = N_BATCH * CHANS             # rows of the flattened input (batch*chans)
PAD1 = KERN // 2                 # block1 temporal padding
SP = SAMPLES + 2 * PAD1          # padded time length
W1C = SP - KERN + 1              # width after block1 temporal conv (= 65)
W1P = W1C // 4                   # width after AvgPool2d((1, 4))  (= 16)
PAD2 = K2 - 1                    # block2 temporal padding (0, 7)
W2PAD = W1P + 2 * PAD2           # padded block2 input width (= 30)
W2C = W2PAD - K2 + 1             # width after block2 conv (= 23)
T2 = W2C // 8                    # width after AvgPool2d((1, 8)) (= 2)
assert F2 * T2 == F2 * (SAMPLES // 32), "dense in_features consistency"

RB1 = N_BATCH * F1D              # rows after block1 depthwise (= 16)
RB2 = N_BATCH * F2               # rows after block2 conv (= 16)
KC1 = KERN * NC                  # block1 fused contraction depth (= 256)
KC2 = K2 * RB1                   # block2 batched contraction depth (= 128)

# -------- layout of the single consolidated parameter slab (rows, 256) -----
S_A1 = 0                         # rows 0:16   cols 0:256   fused block1 weight
S_W3 = 16                        # rows 16:32  cols 0:128   block2 block-diag weight
#                                  rows 16:32  cols 128:130 bias2 | b3 columns
S_P1 = 32                        # rows 32:97  cols 0:30    pool1 (with block2 pad folded)
S_HEAD = 104                     # rows 104:112 cols 0:4    [wd2.T (4 rows); bd1; bd2]
SLAB_ROWS = 112
SLAB_COLS = 256


# ------------------------------- kernel -----------------------------------
def eegnet_kernel(x_ref, w_ref, wd1_ref, out_ref):
    f32 = jnp.float32

    def elu(v):
        # clamp the exp argument so the unselected branch never produces inf
        return jnp.where(v > 0, v, jnp.exp(jnp.minimum(v, 0.0)) - 1.0)

    # -------- block 1 : temporal + depthwise conv fused into ONE matmul ----
    xp = x_ref[...]                                         # (NC, SP) already zero-padded
    col1 = jnp.concatenate([xp[:, k:k + W1C] for k in range(KERN)], axis=0)  # (KC1, W1C)

    a1 = w_ref[S_A1:S_A1 + RB1, 0:KC1]                      # (RB1, KC1)
    bias_blk = w_ref[S_W3:S_W3 + RB1, KC2:KC2 + 2]          # (16, 2) single aligned load
    bias2 = bias_blk[:, 0:1]                                # (RB1, 1)
    b3t = bias_blk[:, 1:2]                                  # (RB2, 1)  (RB1 == RB2 here)

    y2 = jnp.dot(a1, col1, preferred_element_type=f32) + bias2      # (RB1, W1C)
    z2 = elu(y2)

    # -------- AvgPool(1,4); block2 zero padding folded into the pool matrix -
    p1pad = w_ref[S_P1:S_P1 + W1C, 0:W2PAD]                 # (W1C, W2PAD)
    x2 = jnp.dot(z2, p1pad, preferred_element_type=f32)     # (RB1, W2PAD)
    # TODO(synk): Dropout after the pool is identity in eval mode.

    # -------- block 2 : batched im2col conv as ONE matmul -> ELU ------------
    col2 = jnp.concatenate([x2[:, k:k + W2C] for k in range(K2)], axis=0)    # (KC2, W2C)
    w3bd = w_ref[S_W3:S_W3 + RB2, 0:KC2]                    # (RB2, KC2)
    y3 = elu(jnp.dot(w3bd, col2, preferred_element_type=f32) + b3t)          # (RB2, W2C)

    # -------- head : AvgPool(1,8) folded into dense1, ReLU, dense2 ----------
    head = w_ref[S_HEAD:S_HEAD + 8, 0:NB_CLASSES]           # (8, C) one aligned load
    wd2t = head[0:NB_CLASSES, :]                            # dense2 weight (transposed)
    bd1row = head[NB_CLASSES:NB_CLASSES + 1, :]             # (1, C)
    bd2row = head[NB_CLASSES + 1:NB_CLASSES + 2, :]         # (1, C)

    wd1p2 = wd1_ref[...]                                    # (C, F2, W2C)
    rowid = jax.lax.broadcasted_iota(jnp.int32, (N_BATCH, NB_CLASSES), 0)
    z1 = jnp.zeros((N_BATCH, NB_CLASSES), f32)
    for n in range(N_BATCH):
        y3n = y3[n * F2:(n + 1) * F2, :]                    # (F2, W2C) static slice
        zn = jnp.sum(jnp.sum(wd1p2 * y3n[None, :, :], axis=2), axis=1)       # (C,)
        z1 = z1 + jnp.where(rowid == n, zn[None, :], 0.0)

    z1 = jnp.maximum(z1 + bd1row, 0.0)                      # (N, C)
    out_ref[...] = jnp.dot(z1, wd2t, preferred_element_type=f32) + bd2row


# ------------------------------- wrapper -----------------------------------
def _fold_bn(gamma, beta, mean, var):
    s = gamma / jnp.sqrt(var + EPS)
    return s, beta - mean * s


@jax.jit
def eegnet_forward(x, params):
    """x: (N, 1, Chans, Samples) float32 (PyTorch NCHW)."""
    n = x.shape[0]
    assert n == N_BATCH
    f32 = jnp.float32
    HI = jax.lax.Precision.HIGHEST

    # flatten rows (batch*chans, time) and apply block1 zero padding here so
    # the kernel never does masked lane-offset scratch stores.
    x2d = x[:, 0, :, :].astype(f32).reshape(NC, SAMPLES)
    xpad = jnp.pad(x2d, ((0, 0), (PAD1, PAD1)))                 # (NC, SP)

    # ---- fold all BatchNorms into the adjacent linear ops (eval mode) ----
    s1, b1 = _fold_bn(params['bn1_gamma'], params['bn1_beta'],
                      params['bn1_mean'], params['bn1_var'])
    s2, b2 = _fold_bn(params['bn2_gamma'], params['bn2_beta'],
                      params['bn2_mean'], params['bn2_var'])
    s3, b3 = _fold_bn(params['bn3_gamma'], params['bn3_beta'],
                      params['bn3_mean'], params['bn3_var'])

    # block1 temporal taps with BN1 scale folded
    w1s = params['conv1_w'][:, 0, 0, :] * s1[:, None]           # (F1, KERN)

    # block-diagonal (over batch) depthwise weight with BN2 scale folded
    # wdwf[n*F1D+j, f*NC + n'*CHANS + c] = s2[j]*w2[j,c]*(f==j//D)*(n==n')
    w2 = params['conv2_w'][:, 0, :, 0]                          # (F1D, CHANS)
    fsel = (jnp.arange(F1)[None, :] ==
            (jnp.arange(F1D) // DMULT)[:, None]).astype(f32)    # (F1D, F1)
    eye_n = jnp.eye(N_BATCH, dtype=f32)
    wdwf = (eye_n[:, None, None, :, None]
            * (s2[:, None] * w2)[None, :, None, None, :]
            * fsel[None, :, :, None, None]).reshape(RB1, F1 * NC)

    # fold the 16-tap temporal conv INTO the depthwise matmul:
    # a1[p, k*NC + m] = sum_f wdwf[p, f*NC + m] * w1s[f, k]     -> (RB1, 256)
    a1 = jnp.einsum('pfm,fk->pkm', wdwf.reshape(RB1, F1, NC), w1s,
                    precision=HI).reshape(RB1, KC1)
    b1col = jnp.repeat(b1, NC)[:, None]                         # (F1*NC, 1)
    bias2 = jnp.dot(wdwf, b1col, precision=HI) + jnp.tile(b2, N_BATCH)[:, None]

    # pool-1 matrix (floor mode) with the block2 zero padding folded in
    r1 = jnp.arange(W1P * 4)
    p1pad = jnp.zeros((W1C, W2PAD), f32).at[r1, PAD2 + r1 // 4].set(0.25)

    # block2 conv as a block-diagonal (over batch) im2col weight, BN3 folded
    # w3bd[n*F2+o, k*RB1 + n'*F1D + j] = s3[o]*w3[o,j,k]*(n==n')
    w3s = s3[:, None, None] * params['conv3_w'][:, :, 0, :]     # (F2, F1D, K2)
    w3bd = (eye_n[:, None, None, :, None]
            * jnp.transpose(w3s, (0, 2, 1))[None, :, :, None, :]
            ).reshape(RB2, KC2)
    b3t = jnp.tile(b3, N_BATCH)[:, None]                        # (RB2, 1)

    # dense1 with the (1,8) avg-pool folded in (torch channel-major flatten)
    r2 = jnp.arange(T2 * 8)
    p2 = jnp.zeros((W2C, T2), f32).at[r2, r2 // 8].set(0.125)
    wd1p2 = jnp.einsum('cfu,tu->cft',
                       params['dense1_w'].reshape(NB_CLASSES, F2, T2), p2,
                       precision=HI)                            # (C, F2, W2C)

    # ---- one lane-dense parameter slab: a single DMA instead of 12 --------
    slab = jnp.zeros((SLAB_ROWS, SLAB_COLS), f32)
    slab = slab.at[S_A1:S_A1 + RB1, 0:KC1].set(a1)
    slab = slab.at[S_W3:S_W3 + RB2, 0:KC2].set(w3bd)
    slab = slab.at[S_W3:S_W3 + RB1, KC2:KC2 + 1].set(bias2)
    slab = slab.at[S_W3:S_W3 + RB2, KC2 + 1:KC2 + 2].set(b3t)
    slab = slab.at[S_P1:S_P1 + W1C, 0:W2PAD].set(p1pad)
    slab = slab.at[S_HEAD:S_HEAD + NB_CLASSES, 0:NB_CLASSES].set(params['dense2_w'].T)
    slab = slab.at[S_HEAD + NB_CLASSES, 0:NB_CLASSES].set(params['dense1_b'])
    slab = slab.at[S_HEAD + NB_CLASSES + 1, 0:NB_CLASSES].set(params['dense2_b'])

    vmem = lambda: pl.BlockSpec(memory_space=pltpu.MemorySpace.VMEM)
    return pl.pallas_call(
        eegnet_kernel,
        out_shape=jax.ShapeDtypeStruct((N_BATCH, NB_CLASSES), jnp.float32),
        in_specs=[vmem(), vmem(), vmem()],
        out_specs=vmem(),
    )(xpad, slab, wd1p2)


# ----------------------- pure-JAX reference (for checking) -----------------
def eegnet_reference(x, p):
    HI = jax.lax.Precision.HIGHEST

    def bn(y, g, b, m, v):
        sh = (1, -1, 1, 1)
        return ((y - m.reshape(sh)) / jnp.sqrt(v.reshape(sh) + EPS)
                * g.reshape(sh) + b.reshape(sh))

    def elu(y):
        return jnp.where(y > 0, y, jnp.exp(y) - 1.0)

    dn = ('NCHW', 'OIHW', 'NCHW')
    y = jax.lax.conv_general_dilated(x, p['conv1_w'], (1, 1),
                                     [(0, 0), (PAD1, PAD1)],
                                     dimension_numbers=dn, precision=HI)
    y = bn(y, p['bn1_gamma'], p['bn1_beta'], p['bn1_mean'], p['bn1_var'])
    y = jax.lax.conv_general_dilated(y, p['conv2_w'], (1, 1), [(0, 0), (0, 0)],
                                     dimension_numbers=dn, feature_group_count=F1,
                                     precision=HI)
    y = bn(y, p['bn2_gamma'], p['bn2_beta'], p['bn2_mean'], p['bn2_var'])
    y = elu(y)
    y = y[..., :(y.shape[-1] // 4) * 4]
    y = y.reshape(y.shape[0], y.shape[1], y.shape[2], -1, 4).mean(-1)
    y = jax.lax.conv_general_dilated(y, p['conv3_w'], (1, 1),
                                     [(0, 0), (PAD2, PAD2)],
                                     dimension_numbers=dn, precision=HI)
    y = bn(y, p['bn3_gamma'], p['bn3_beta'], p['bn3_mean'], p['bn3_var'])
    y = elu(y)
    y = y[..., :(y.shape[-1] // 8) * 8]
    y = y.reshape(y.shape[0], y.shape[1], y.shape[2], -1, 8).mean(-1)
    feat = y.reshape(y.shape[0], -1)
    z = jnp.dot(feat, p['dense1_w'].T, precision=HI) + p['dense1_b']
    z = jnp.maximum(z, 0.0)
    return jnp.dot(z, p['dense2_w'].T, precision=HI) + p['dense2_b']


# --------------------------------- main ------------------------------------
if __name__ == "__main__":
    key = jax.random.PRNGKey(0)
    ks = jax.random.split(key, 20)

    def nrm(k, shape, scale):
        return scale * jax.random.normal(k, shape, jnp.float32)

    params = {
        'conv1_w': nrm(ks[0], (F1, 1, 1, KERN), 1.0 / KERN ** 0.5),
        'bn1_gamma': 1.0 + 0.1 * jax.random.normal(ks[1], (F1,), jnp.float32),
        'bn1_beta': nrm(ks[2], (F1,), 0.1),
        'bn1_mean': nrm(ks[3], (F1,), 0.1),
        'bn1_var': 1.0 + 0.2 * jax.random.uniform(ks[4], (F1,), jnp.float32),
        'conv2_w': nrm(ks[5], (F1D, 1, CHANS, 1), 1.0 / CHANS ** 0.5),
        'bn2_gamma': 1.0 + 0.1 * jax.random.normal(ks[6], (F1D,), jnp.float32),
        'bn2_beta': nrm(ks[7], (F1D,), 0.1),
        'bn2_mean': nrm(ks[8], (F1D,), 0.1),
        'bn2_var': 1.0 + 0.2 * jax.random.uniform(ks[9], (F1D,), jnp.float32),
        'conv3_w': nrm(ks[10], (F2, F1D, 1, K2), 1.0 / (F1D * K2) ** 0.5),
        'bn3_gamma': 1.0 + 0.1 * jax.random.normal(ks[11], (F2,), jnp.float32),
        'bn3_beta': nrm(ks[12], (F2,), 0.1),
        'bn3_mean': nrm(ks[13], (F2,), 0.1),
        'bn3_var': 1.0 + 0.2 * jax.random.uniform(ks[14], (F2,), jnp.float32),
        'dense1_w': nrm(ks[15], (NB_CLASSES, F2 * T2), 1.0 / (F2 * T2) ** 0.5),
        'dense1_b': nrm(ks[16], (NB_CLASSES,), 0.1),
        'dense2_w': nrm(ks[17], (NB_CLASSES, NB_CLASSES), 0.5),
        'dense2_b': nrm(ks[18], (NB_CLASSES,), 0.1),
    }
    x = jax.random.normal(ks[19], (N_BATCH, 1, CHANS, SAMPLES), jnp.float32)

    out = jax.block_until_ready(eegnet_forward(x, params))
    ref = jax.block_until_ready(eegnet_reference(x, params))

    assert out.shape == (N_BATCH, NB_CLASSES)
    assert bool(jnp.all(jnp.isfinite(out)))
    max_err = float(jnp.max(jnp.abs(out - ref)))
    assert max_err < 1e-3, f"kernel/reference mismatch: {max_err}"
    print("KERNEL_OK")
</pallas_src>

<mosaic_0001>
module attributes {stable_mosaic.version = 11 : i64} {
  func.func @eegnet_kernel(%arg0: memref<16x80xf32, #tpu.memory_space<vmem>>, %arg1: memref<112x256xf32, #tpu.memory_space<vmem>>, %arg2: memref<4x8x23xf32, #tpu.memory_space<vmem>>, %arg3: memref<2x4xf32, #tpu.memory_space<vmem>>) attributes {dimension_semantics = [], scalar_prefetch = 0 : i64, scratch_operands = 0 : i64, tpu.core_type = #tpu.core_type<tc>} {
    %c0 = arith.constant 0 : index
    %c0_0 = arith.constant 0 : index
    %0 = vector.load %arg0[%c0, %c0_0] : memref<16x80xf32, #tpu.memory_space<vmem>>, vector<16x80xf32>
    %1 = vector.extract_strided_slice %0 {offsets = [0, 0], sizes = [16, 65], strides = [1, 1]} : vector<16x80xf32> to vector<16x65xf32>
    %2 = vector.extract_strided_slice %0 {offsets = [0, 1], sizes = [16, 65], strides = [1, 1]} : vector<16x80xf32> to vector<16x65xf32>
    %3 = vector.extract_strided_slice %0 {offsets = [0, 2], sizes = [16, 65], strides = [1, 1]} : vector<16x80xf32> to vector<16x65xf32>
    %4 = vector.extract_strided_slice %0 {offsets = [0, 3], sizes = [16, 65], strides = [1, 1]} : vector<16x80xf32> to vector<16x65xf32>
    %5 = vector.extract_strided_slice %0 {offsets = [0, 4], sizes = [16, 65], strides = [1, 1]} : vector<16x80xf32> to vector<16x65xf32>
    %6 = vector.extract_strided_slice %0 {offsets = [0, 5], sizes = [16, 65], strides = [1, 1]} : vector<16x80xf32> to vector<16x65xf32>
    %7 = vector.extract_strided_slice %0 {offsets = [0, 6], sizes = [16, 65], strides = [1, 1]} : vector<16x80xf32> to vector<16x65xf32>
    %8 = vector.extract_strided_slice %0 {offsets = [0, 7], sizes = [16, 65], strides = [1, 1]} : vector<16x80xf32> to vector<16x65xf32>
    %9 = vector.extract_strided_slice %0 {offsets = [0, 8], sizes = [16, 65], strides = [1, 1]} : vector<16x80xf32> to vector<16x65xf32>
    %10 = vector.extract_strided_slice %0 {offsets = [0, 9], sizes = [16, 65], strides = [1, 1]} : vector<16x80xf32> to vector<16x65xf32>
    %11 = vector.extract_strided_slice %0 {offsets = [0, 10], sizes = [16, 65], strides = [1, 1]} : vector<16x80xf32> to vector<16x65xf32>
    %12 = vector.extract_strided_slice %0 {offsets = [0, 11], sizes = [16, 65], strides = [1, 1]} : vector<16x80xf32> to vector<16x65xf32>
    %13 = vector.extract_strided_slice %0 {offsets = [0, 12], sizes = [16, 65], strides = [1, 1]} : vector<16x80xf32> to vector<16x65xf32>
    %14 = vector.extract_strided_slice %0 {offsets = [0, 13], sizes = [16, 65], strides = [1, 1]} : vector<16x80xf32> to vector<16x65xf32>
    %15 = vector.extract_strided_slice %0 {offsets = [0, 14], sizes = [16, 65], strides = [1, 1]} : vector<16x80xf32> to vector<16x65xf32>
    %16 = vector.extract_strided_slice %0 {offsets = [0, 15], sizes = [16, 65], strides = [1, 1]} : vector<16x80xf32> to vector<16x65xf32>
    %17 = tpu.concatenate %1, %2, %3, %4, %5, %6, %7, %8, %9, %10, %11, %12, %13, %14, %15, %16 in 0 : vector<16x65xf32>, vector<16x65xf32>, vector<16x65xf32>, vector<16x65xf32>, vector<16x65xf32>, vector<16x65xf32>, vector<16x65xf32>, vector<16x65xf32>, vector<16x65xf32>, vector<16x65xf32>, vector<16x65xf32>, vector<16x65xf32>, vector<16x65xf32>, vector<16x65xf32>, vector<16x65xf32>, vector<16x65xf32> -> vector<256x65xf32>
    %c0_1 = arith.constant 0 : index
    %c0_2 = arith.constant 0 : index
    %18 = vector.load %arg1[%c0_1, %c0_2] : memref<112x256xf32, #tpu.memory_space<vmem>>, vector<16x256xf32>
    %c16 = arith.constant 16 : index
    %c128 = arith.constant 128 : index
    %19 = vector.load %arg1[%c16, %c128] : memref<112x256xf32, #tpu.memory_space<vmem>>, vector<16x2xf32>
    %20 = vector.extract_strided_slice %19 {offsets = [0, 0], sizes = [16, 1], strides = [1, 1]} : vector<16x2xf32> to vector<16x1xf32>
    %21 = vector.extract_strided_slice %19 {offsets = [0, 1], sizes = [16, 1], strides = [1, 1]} : vector<16x2xf32> to vector<16x1xf32>
    %cst = arith.constant dense<0.000000e+00> : vector<16x65xf32>
    %22 = tpu.matmul %18, %17, %cst {dimension_numbers = #tpu.dot_dimension_numbers<[1], [0], [0], [1], [0, 0, 1, 1], [], []>} : vector<16x256xf32>, vector<256x65xf32>, vector<16x65xf32> -> vector<16x65xf32>
    %23 = vector.broadcast %20 : vector<16x1xf32> to vector<16x65xf32>
    %24 = arith.addf %22, %23 : vector<16x65xf32>
    %cst_3 = arith.constant 0.000000e+00 : f32
    %25 = vector.broadcast %cst_3 : f32 to vector<16x65xf32>
    %26 = arith.cmpf ogt, %24, %25 : vector<16x65xf32>
    %cst_4 = arith.constant 0.000000e+00 : f32
    %27 = vector.broadcast %cst_4 : f32 to vector<16x65xf32>
    %28 = arith.minimumf %24, %27 : vector<16x65xf32>
    %29 = math.exp %28 : vector<16x65xf32>
    %cst_5 = arith.constant 1.000000e+00 : f32
    %30 = vector.broadcast %cst_5 : f32 to vector<16x65xf32>
    %31 = arith.subf %29, %30 : vector<16x65xf32>
    %32 = arith.select %26, %24, %31 : vector<16x65xi1>, vector<16x65xf32>
    %c32 = arith.constant 32 : index
    %c0_6 = arith.constant 0 : index
    %33 = vector.load %arg1[%c32, %c0_6] : memref<112x256xf32, #tpu.memory_space<vmem>>, vector<65x30xf32>
    %cst_7 = arith.constant dense<0.000000e+00> : vector<16x30xf32>
    %34 = tpu.matmul %32, %33, %cst_7 {dimension_numbers = #tpu.dot_dimension_numbers<[1], [0], [0], [1], [0, 0, 1, 1], [], []>} : vector<16x65xf32>, vector<65x30xf32>, vector<16x30xf32> -> vector<16x30xf32>
    %35 = vector.extract_strided_slice %34 {offsets = [0, 0], sizes = [16, 23], strides = [1, 1]} : vector<16x30xf32> to vector<16x23xf32>
    %36 = vector.extract_strided_slice %34 {offsets = [0, 1], sizes = [16, 23], strides = [1, 1]} : vector<16x30xf32> to vector<16x23xf32>
    %37 = vector.extract_strided_slice %34 {offsets = [0, 2], sizes = [16, 23], strides = [1, 1]} : vector<16x30xf32> to vector<16x23xf32>
    %38 = vector.extract_strided_slice %34 {offsets = [0, 3], sizes = [16, 23], strides = [1, 1]} : vector<16x30xf32> to vector<16x23xf32>
    %39 = vector.extract_strided_slice %34 {offsets = [0, 4], sizes = [16, 23], strides = [1, 1]} : vector<16x30xf32> to vector<16x23xf32>
    %40 = vector.extract_strided_slice %34 {offsets = [0, 5], sizes = [16, 23], strides = [1, 1]} : vector<16x30xf32> to vector<16x23xf32>
    %41 = vector.extract_strided_slice %34 {offsets = [0, 6], sizes = [16, 23], strides = [1, 1]} : vector<16x30xf32> to vector<16x23xf32>
    %42 = vector.extract_strided_slice %34 {offsets = [0, 7], sizes = [16, 23], strides = [1, 1]} : vector<16x30xf32> to vector<16x23xf32>
    %43 = tpu.concatenate %35, %36, %37, %38, %39, %40, %41, %42 in 0 : vector<16x23xf32>, vector<16x23xf32>, vector<16x23xf32>, vector<16x23xf32>, vector<16x23xf32>, vector<16x23xf32>, vector<16x23xf32>, vector<16x23xf32> -> vector<128x23xf32>
    %c16_8 = arith.constant 16 : index
    %c0_9 = arith.constant 0 : index
    %44 = vector.load %arg1[%c16_8, %c0_9] : memref<112x256xf32, #tpu.memory_space<vmem>>, vector<16x128xf32>
    %cst_10 = arith.constant dense<0.000000e+00> : vector<16x23xf32>
    %45 = tpu.matmul %44, %43, %cst_10 {dimension_numbers = #tpu.dot_dimension_numbers<[1], [0], [0], [1], [0, 0, 1, 1], [], []>} : vector<16x128xf32>, vector<128x23xf32>, vector<16x23xf32> -> vector<16x23xf32>
    %46 = vector.broadcast %21 : vector<16x1xf32> to vector<16x23xf32>
    %47 = arith.addf %45, %46 : vector<16x23xf32>
    %cst_11 = arith.constant 0.000000e+00 : f32
    %48 = vector.broadcast %cst_11 : f32 to vector<16x23xf32>
    %49 = arith.cmpf ogt, %47, %48 : vector<16x23xf32>
    %cst_12 = arith.constant 0.000000e+00 : f32
    %50 = vector.broadcast %cst_12 : f32 to vector<16x23xf32>
    %51 = arith.minimumf %47, %50 : vector<16x23xf32>
    %52 = math.exp %51 : vector<16x23xf32>
    %cst_13 = arith.constant 1.000000e+00 : f32
    %53 = vector.broadcast %cst_13 : f32 to vector<16x23xf32>
    %54 = arith.subf %52, %53 : vector<16x23xf32>
    %55 = arith.select %49, %47, %54 : vector<16x23xi1>, vector<16x23xf32>
    %c104 = arith.constant 104 : index
    %c0_14 = arith.constant 0 : index
    %56 = vector.load %arg1[%c104, %c0_14] : memref<112x256xf32, #tpu.memory_space<vmem>>, vector<8x4xf32>
    %57 = vector.extract_strided_slice %56 {offsets = [0, 0], sizes = [4, 4], strides = [1, 1]} : vector<8x4xf32> to vector<4x4xf32>
    %58 = vector.extract_strided_slice %56 {offsets = [4, 0], sizes = [1, 4], strides = [1, 1]} : vector<8x4xf32> to vector<1x4xf32>
    %59 = vector.extract_strided_slice %56 {offsets = [5, 0], sizes = [1, 4], strides = [1, 1]} : vector<8x4xf32> to vector<1x4xf32>
    %c0_15 = arith.constant 0 : index
    %c0_16 = arith.constant 0 : index
    %c0_17 = arith.constant 0 : index
    %60 = vector.load %arg2[%c0_15, %c0_16, %c0_17] : memref<4x8x23xf32, #tpu.memory_space<vmem>>, vector<4x8x23xf32>
    %61 = tpu.iota {dimensions = array<i32: 0>} : vector<2x4xi32>
    %cst_18 = arith.constant 0.000000e+00 : f32
    %62 = vector.broadcast %cst_18 : f32 to vector<2x4xf32>
    %63 = vector.extract_strided_slice %55 {offsets = [0, 0], sizes = [8, 23], strides = [1, 1]} : vector<16x23xf32> to vector<8x23xf32>
    %64 = vector.shape_cast %63 : vector<8x23xf32> to vector<1x8x23xf32>
    %65 = vector.broadcast %64 : vector<1x8x23xf32> to vector<4x8x23xf32>
    %66 = arith.mulf %60, %65 : vector<4x8x23xf32>
    %cst_19 = arith.constant dense<0.000000e+00> : vector<4x8xf32>
    %67 = vector.multi_reduction <add>, %66, %cst_19 [2] : vector<4x8x23xf32> to vector<4x8xf32>
    %cst_20 = arith.constant dense<0.000000e+00> : vector<4xf32>
    %68 = vector.multi_reduction <add>, %67, %cst_20 [1] : vector<4x8xf32> to vector<4xf32>
    %c0_i32 = arith.constant 0 : i32
    %69 = vector.broadcast %c0_i32 : i32 to vector<2x4xi32>
    %70 = arith.cmpi eq, %61, %69 : vector<2x4xi32>
    %71 = vector.shape_cast %68 : vector<4xf32> to vector<1x4xf32>
    %cst_21 = arith.constant 0.000000e+00 : f32
    %72 = vector.shape_cast %71 : vector<1x4xf32> to vector<1x4xf32>
    %73 = vector.broadcast %72 : vector<1x4xf32> to vector<2x4xf32>
    %74 = vector.broadcast %cst_21 : f32 to vector<2x4xf32>
    %75 = arith.select %70, %73, %74 : vector<2x4xi1>, vector<2x4xf32>
    %76 = arith.addf %62, %75 : vector<2x4xf32>
    %77 = vector.extract_strided_slice %55 {offsets = [8, 0], sizes = [8, 23], strides = [1, 1]} : vector<16x23xf32> to vector<8x23xf32>
    %78 = vector.shape_cast %77 : vector<8x23xf32> to vector<1x8x23xf32>
    %79 = vector.broadcast %78 : vector<1x8x23xf32> to vector<4x8x23xf32>
    %80 = arith.mulf %60, %79 : vector<4x8x23xf32>
    %cst_22 = arith.constant dense<0.000000e+00> : vector<4x8xf32>
    %81 = vector.multi_reduction <add>, %80, %cst_22 [2] : vector<4x8x23xf32> to vector<4x8xf32>
    %cst_23 = arith.constant dense<0.000000e+00> : vector<4xf32>
    %82 = vector.multi_reduction <add>, %81, %cst_23 [1] : vector<4x8xf32> to vector<4xf32>
    %c1_i32 = arith.constant 1 : i32
    %83 = vector.broadcast %c1_i32 : i32 to vector<2x4xi32>
    %84 = arith.cmpi eq, %61, %83 : vector<2x4xi32>
    %85 = vector.shape_cast %82 : vector<4xf32> to vector<1x4xf32>
    %cst_24 = arith.constant 0.000000e+00 : f32
    %86 = vector.shape_cast %85 : vector<1x4xf32> to vector<1x4xf32>
    %87 = vector.broadcast %86 : vector<1x4xf32> to vector<2x4xf32>
    %88 = vector.broadcast %cst_24 : f32 to vector<2x4xf32>
    %89 = arith.select %84, %87, %88 : vector<2x4xi1>, vector<2x4xf32>
    %90 = arith.addf %76, %89 : vector<2x4xf32>
    %91 = vector.broadcast %58 : vector<1x4xf32> to vector<2x4xf32>
    %92 = arith.addf %90, %91 : vector<2x4xf32>
    %cst_25 = arith.constant 0.000000e+00 : f32
    %93 = vector.broadcast %cst_25 : f32 to vector<2x4xf32>
    %94 = arith.maximumf %92, %93 : vector<2x4xf32>
    %cst_26 = arith.constant dense<0.000000e+00> : vector<2x4xf32>
    %95 = tpu.matmul %94, %57, %cst_26 {dimension_numbers = #tpu.dot_dimension_numbers<[1], [0], [0], [1], [0, 0, 1, 1], [], []>} : vector<2x4xf32>, vector<4x4xf32>, vector<2x4xf32> -> vector<2x4xf32>
    %96 = vector.broadcast %59 : vector<1x4xf32> to vector<2x4xf32>
    %97 = arith.addf %95, %96 : vector<2x4xf32>
    %c0_27 = arith.constant 0 : index
    %c0_28 = arith.constant 0 : index
    %98 = vector.load %arg3[%c0_27, %c0_28] : memref<2x4xf32, #tpu.memory_space<vmem>>, vector<2x4xf32>
    tpu.vector_store %arg3[%c0_27, %c0_28], %97 {strides = array<i32>} : memref<2x4xf32, #tpu.memory_space<vmem>>, vector<2x4xf32>,
    return
  }
}

</mosaic_0001>

<bundles_post_ra>
// kernel: tile.18
= control target key start
LH: loop header
LB: loop body
LE: loop exit
PB: predicated region body
PF: predicated region fallthrough
CT: control target
= control target key end

     0   :  { %s22_s0 = inlined_call_operand.vmem [shape: f32[8], index: 0, kind: input, shape index: {}]   ;;  %s23_s1 = inlined_call_operand.vmem [shape: f32[2,8], index: 1, kind: output, shape index: {}]  }
   0x1   :  { %v4_v0 = vld [vmem:[%s22_s0] ss:$0 sm:$0xff] }
   0x2   :  { %5 = vst [vmem:[%s23_s1] sm:$0x3] %v4_v0 }

// kernel: eegnet_forward.1
= control target key start
LH: loop header
LB: loop body
LE: loop exit
PB: predicated region body
PF: predicated region fallthrough
CT: control target
= control target key end

     0   :  { %s1080_s0 = inlined_call_operand.vmem [shape: f32[16,80], index: 0, kind: input, shape index: {}]   ;;  %s1081_s1 = inlined_call_operand.vmem [shape: f32[112,256], index: 1, kind: input, shape index: {}]   ;;  %s1082_s2 = inlined_call_operand.vmem [shape: f32[4,8,23], index: 2, kind: input, shape index: {}]   ;;  %s1083_s3 = inlined_call_operand.hbm [shape: f32[2,4], index: 3, kind: output, shape index: {}]  }
   0x1   :  { %v906_v0 = vld [vmem:[%s1080_s0 + $0x8] sm:$0xff]  ;;  %v911_v1 = vld [vmem:[%s1080_s0] sm:$0xff] }
   0x2   :  { %8 = vsyncpa [#allocation3], 0  ;;  %s863_s16 = smov 113   ;;  %s864_s17 = smov 121   ;;  %v110_v2 = vld [vmem:[%s1081_s1 + $0x8] sm:$0xff]  ;;  %v877_v3 = vmov 0  }
   0x3   :  { %105 = vrot.lane.b32.xlu0 %v906_v0, %s863_s16  ;;  %103 = vrot.lane.b32.xlu1 %v911_v1, %s863_s16  ;;  %s865_s18 = smov 114   ;;  %s866_s19 = smov 122   ;;  %v963_v4 = vld [vmem:[%s1081_s1 + $0x28] sm:$0xff]  ;;  %v968_v5 = vld [vmem:[%s1081_s1 + $0x38] sm:$0xff]  ;;  %vm228_vm0 = vcmask 1040384   ;;  %vm221_vm1 = vcmask 531456  }
   0x4   :  { %s867_s0 = smov 115   ;;  %s868_s20 = smov 123   ;;  %189 = vmatprep.mubr.f32.mxu0 %v110_v2  ;;  %829 = vset.pattern.permute.xlu0 %v877_v3  ;;  %v109_v36 = vld [vmem:[%s1081_s1] sm:$0xff]  ;;  %v112_v37 = vld [vmem:[%s1081_s1 + $0x18] sm:$0xff]  ;;  %v111_v38 = vld [vmem:[%s1081_s1 + $0x10] sm:$0xff]  ;;  %vm459_vm5 = vcmask 187392  }
   0x5   :  { %s869_s21 = smov 116   ;;  %s870_s22 = smov 124   ;;  %830 = vset.pattern.permute.xlu1 %v877_v3  ;;  %v220_v39 = vld [vmem:[%s1081_s1 + $0xc0] sm:$0x1]  ;;  %v219_v40 = vld [vmem:[%s1081_s1 + $0xb0] sm:$0xff]  ;;  %vm494_vm7 = vcmask 1041409  }
   0x6   :  { %s871_s23 = smov 117   ;;  %s872_s24 = smov 125   ;;  %748 = vmatprep.subr.msk.mxu1 %vm228_vm0, %v220_v39  ;;  %v218_v41 = vld [vmem:[%s1081_s1 + $0xa0] sm:$0xff]  ;;  %v217_v42 = vld [vmem:[%s1081_s1 + $0x90] sm:$0xff]  ;;  %vm496_vm8 = vcmask 1042434   ;;  %vm498_vm9 = vcmask 1043459  }
   0x7   :  { %57 = vrot.lane.b32.xlu0 %v906_v0, %s864_s17  ;;  %55 = vrot.lane.b32.xlu1 %v911_v1, %s864_s17  ;;  %s873_s25 = smov 118   ;;  %s874_s26 = smov 126   ;;  %v216_v43 = vld [vmem:[%s1081_s1 + $0x80] sm:$0xff]  ;;  %v215_v44 = vld [vmem:[%s1081_s1 + $0x70] sm:$0xff]  ;;  %vm501_vm10 = vcmask 60416   ;;  %vm580_vm11 = vcmask 1043456  }
   0x8   :  { %s875_s29 = smov 119   ;;  %s876_s30 = smov 127   ;;  %749 = vmatpush3.msk.msra.mxu1 %vm228_vm0, %v220_v39  ;;  %v214_v45 = vld [vmem:[%s1081_s1 + $0x60] sm:$0xff]  ;;  %v213_v46 = vld [vmem:[%s1081_s1 + $0x50] sm:$0xff]  ;;  %vm881_vm12 = vmmov 0   ;;  %vm576_vm15 = vcmask 31744  }
   0x9   :  { %s878_s4 = smov 120   ;;  %750 = vmatprep.subr.mxu1 %v219_v40  ;;  %v212_v47 = vld [vmem:[%s1081_s1 + $0x40] sm:$0xff]  ;;  %vm654_vm0 = vcmask 25600  }
   0xa   :  { %751 = vmatpush3.msra.mxu1 %v219_v40  ;;  %v451_v40 = vld [vmem:[%s1082_s2 + $0x10] sm:$0xff] }
   0xb   :  { %99 = vrot.lane.b32.xlu0 %v906_v0, %s865_s18  ;;  %51 = vrot.lane.b32.xlu1 %v906_v0, %s866_s19 }
   0xc   :  { %752 = vmatprep.subr.mxu1 %v218_v41 }
   0xd   :  { %753 = vmatpush3.msra.mxu1 %v218_v41 }
   0xe   :  { %754 = vmatprep.subr.mxu1 %v217_v42 }
   0xf   :  { %97 = vrot.lane.b32.xlu0 %v911_v1, %s865_s18  ;;  %49 = vrot.lane.b32.xlu1 %v911_v1, %s866_s19 }
  0x10   :  { %755 = vmatpush3.msra.mxu1 %v217_v42 }
  0x11   :  { %756 = vmatprep.subr.mxu1 %v216_v43 }
  0x12   :  { %757 = vmatpush3.msra.mxu1 %v216_v43 }
  0x13   :  { %93 = vrot.lane.b32.xlu0 %v906_v0, %s867_s0  ;;  %45 = vrot.lane.b32.xlu1 %v906_v0, %s868_s20 }
  0x14   :  { %758 = vmatprep.subr.mxu1 %v215_v44 }
  0x15   :  { %759 = vmatpush3.msra.mxu1 %v215_v44 }
  0x16   :  { %760 = vmatprep.subr.mxu1 %v214_v45 }
  0x17   :  { %91 = vrot.lane.b32.xlu0 %v911_v1, %s867_s0  ;;  %43 = vrot.lane.b32.xlu1 %v911_v1, %s868_s20 }
  0x18   :  { %761 = vmatpush3.msra.mxu1 %v214_v45 }
  0x19   :  { %762 = vmatprep.subr.mxu1 %v213_v46 }
  0x1a   :  { %763 = vmatpush3.msra.mxu1 %v213_v46 }
  0x1b   :  { %87 = vrot.lane.b32.xlu0 %v906_v0, %s869_s21  ;;  %39 = vrot.lane.b32.xlu1 %v906_v0, %s870_s22 }
  0x1c   :  { %764 = vmatprep.subr.mxu1 %v212_v47 }
  0x1d   :  { %765 = vmatpush3.msra.mxu1 %v212_v47 }
  0x1f   :  { %85 = vrot.lane.b32.xlu0 %v911_v1, %s869_s21  ;;  %37 = vrot.lane.b32.xlu1 %v911_v1, %s870_s22 }
  0x23   :  { %81 = vrot.lane.b32.xlu0 %v906_v0, %s871_s23  ;;  %33 = vrot.lane.b32.xlu1 %v906_v0, %s872_s24 }
  0x27   :  { %79 = vrot.lane.b32.xlu0 %v911_v1, %s871_s23  ;;  %31 = vrot.lane.b32.xlu1 %v911_v1, %s872_s24 }
  0x2b   :  { %75 = vrot.lane.b32.xlu0 %v906_v0, %s873_s25  ;;  %27 = vrot.lane.b32.xlu1 %v906_v0, %s874_s26 }
  0x2f   :  { %73 = vrot.lane.b32.xlu0 %v911_v1, %s873_s25  ;;  %25 = vrot.lane.b32.xlu1 %v911_v1, %s874_s26 }
  0x33   :  { %69 = vrot.lane.b32.xlu0 %v906_v0, %s875_s29  ;;  %21 = vrot.lane.b32.xlu1 %v906_v0, %s876_s30 }
  0x37   :  { %67 = vrot.lane.b32.xlu0 %v911_v1, %s875_s29  ;;  %19 = vrot.lane.b32.xlu1 %v911_v1, %s876_s30 }
  0x3b   :  { %63 = vrot.lane.b32.xlu0 %v906_v0, %s878_s4  ;;  %61 = vrot.lane.b32.xlu1 %v911_v1, %s878_s4 }
  0x3f   :  { %117 = vperm.xlu0 %829, %v963_v4   ;;  %122 = vperm.xlu1 %830, %v968_v5  }
  0x75   :  { %v106_v6 = vpop.permute.xlu0 %105  ;;  %v104_v7 = vpop.permute.xlu1 %103 }
  0x76   :  { %679 = vmatprep.subr.mxu0 %v106_v6 }
  0x79   :  { %v58_v8 = vpop.permute.xlu0 %57  ;;  %v56_v9 = vpop.permute.xlu1 %55 }
  0x7a   :  { %680 = vmatpush3.msra.mxu0 %v58_v8  ;;  %v351_v8 = vld [vmem:[%s1081_s1 + $0x20] sm:$0xff] }
  0x7b   :  { %681 = vmatprep.subr.mxu0 %v104_v7 }
  0x7c   :  { %682 = vmatpush3.msra.mxu0 %v56_v9  ;;  %v879_v9 = vmov 1  }
  0x7d   :  { %v100_v10 = vpop.permute.xlu0 %99  ;;  %v52_v11 = vpop.permute.xlu1 %51  ;;  %832 = vset.pattern.permute.xlu0 %v879_v9  ;;  %831 = vset.pattern.permute.xlu1 %v879_v9 }
  0x7e   :  { %683 = vmatprep.subr.mxu0 %v100_v10 }
  0x7f   :  { %684 = vmatpush3.msra.mxu0 %v52_v11 }
  0x81   :  { %v98_v12 = vpop.permute.xlu0 %97  ;;  %v50_v13 = vpop.permute.xlu1 %49 }
  0x82   :  { %685 = vmatprep.subr.mxu0 %v98_v12 }
  0x83   :  { %686 = vmatpush3.msra.mxu0 %v50_v13 }
  0x85   :  { %v94_v14 = vpop.permute.xlu0 %93  ;;  %v46_v15 = vpop.permute.xlu1 %45 }
  0x86   :  { %687 = vmatprep.subr.mxu0 %v94_v14 }
  0x87   :  { %688 = vmatpush3.msra.mxu0 %v46_v15 }
  0x89   :  { %v92_v16 = vpop.permute.xlu0 %91  ;;  %v44_v17 = vpop.permute.xlu1 %43 }
  0x8a   :  { %689 = vmatprep.subr.mxu0 %v92_v16 }
  0x8b   :  { %690 = vmatpush3.msra.mxu0 %v44_v17 }
  0x8d   :  { %v88_v18 = vpop.permute.xlu0 %87  ;;  %v40_v19 = vpop.permute.xlu1 %39 }
  0x8e   :  { %691 = vmatprep.subr.mxu0 %v88_v18 }
  0x8f   :  { %692 = vmatpush3.msra.mxu0 %v40_v19 }
  0x91   :  { %v86_v20 = vpop.permute.xlu0 %85  ;;  %v38_v21 = vpop.permute.xlu1 %37 }
  0x92   :  { %693 = vmatprep.subr.mxu0 %v86_v20 }
  0x93   :  { %694 = vmatpush3.msra.mxu0 %v38_v21 }
  0x95   :  { %v82_v22 = vpop.permute.xlu0 %81  ;;  %v34_v23 = vpop.permute.xlu1 %33 }
  0x96   :  { %695 = vmatprep.subr.mxu0 %v82_v22  ;;  %v352_v22 = vld [vmem:[%s1081_s1 + $0x30] sm:$0xff] }
  0x97   :  { %696 = vmatpush3.msra.mxu0 %v34_v23 }
  0x99   :  { %v80_v24 = vpop.permute.xlu0 %79  ;;  %v32_v25 = vpop.permute.xlu1 %31 }
  0x9a   :  { %697 = vmatprep.subr.mxu0 %v80_v24 }
  0x9b   :  { %698 = vmatpush3.msra.mxu0 %v32_v25 }
  0x9d   :  { %v76_v26 = vpop.permute.xlu0 %75  ;;  %v28_v27 = vpop.permute.xlu1 %27 }
  0x9e   :  { %699 = vmatprep.subr.mxu0 %v76_v26 }
  0x9f   :  { %700 = vmatpush3.msra.mxu0 %v28_v27 }
  0xa1   :  { %v74_v28 = vpop.permute.xlu0 %73  ;;  %v26_v29 = vpop.permute.xlu1 %25 }
  0xa2   :  { %701 = vmatprep.subr.mxu0 %v74_v28 }
  0xa3   :  { %702 = vmatpush3.msra.mxu0 %v26_v29 }
  0xa5   :  { %v70_v30 = vpop.permute.xlu0 %69  ;;  %v22_v31 = vpop.permute.xlu1 %21 }
  0xa6   :  { %703 = vmatprep.subr.mxu0 %v70_v30 }
  0xa7   :  { %704 = vmatpush3.msra.mxu0 %v22_v31 }
  0xa9   :  { %v68_v32 = vpop.permute.xlu0 %67  ;;  %v20_v33 = vpop.permute.xlu1 %19 }
  0xaa   :  { %705 = vmatprep.subr.mxu0 %v68_v32 }
  0xab   :  { %706 = vmatpush3.msra.mxu0 %v20_v33 }
  0xad   :  { %v64_v34 = vpop.permute.xlu0 %63  ;;  %v62_v35 = vpop.permute.xlu1 %61 }
  0xae   :  { %707 = vmatprep.subr.mxu0 %v64_v34 }
  0xaf   :  { %708 = vmatpush3.msra.mxu0 %v906_v0 }
  0xb0   :  { %709 = vmatprep.subr.mxu0 %v62_v35  ;;  %v450_v35 = vld [vmem:[%s1082_s2 + $0x8] sm:$0xff] }
  0xb1   :  { %710 = vmatpush3.msra.mxu0 %v911_v1 }
  0xb2   :  { %190 = vmatmul.mubr.f32.vlgmr.msra.gmra.mxu0 %v109_v36  ;;  %v449_v36 = vld [vmem:[%s1082_s2] sm:$0xff] }
  0xb3   :  { %194 = vmatprep.mubr.f32.mxu0 %v112_v37 }
  0xb6   :  { %195 = vmatmul.mubr.f32.gmra.mxu0 %v111_v38 }
  0xba   :  { %v118_v50 = vpop.permute.xlu0 %117  ;;  %v123_v55 = vpop.permute.xlu1 %122 }
 0x172   :  { %v711_v48 = vpop.f32.mrf.mxu0 }
 0x174   :  { %v712_v49 = vpop.f32.mrf.mxu0 }
 0x175   :  { %v713_v51 = vadd.f32 %v712_v49, %v711_v48 }
 0x176   :  { %v714_v52 = vpop.f32.mrf.mxu0 }
 0x177   :  { %v192_v53 = vadd.f32 %v713_v51, %v118_v50 }
 0x178   :  { %v715_v54 = vpop.f32.mrf.mxu0 }
 0x179   :  { %v202_v56 = vmin.f32 %v192_v53, 0.0  ;;  %v716_v57 = vadd.f32 %v715_v54, %v714_v52  ;;  %vm200_vm2 = vcmp.gt.f32.partialorder %v192_v53, 0.0  ;;  %v452_v52 = vld [vmem:[%s1082_s2 + $0x18] sm:$0xff] }
 0x17b   :  { %v204_v58 = vmul.f32 1.442695, %v202_v56  ;;  %v197_v59 = vadd.f32 %v716_v57, %v123_v55 }
 0x17d   :  { %833 = vpow2.f32 %v204_v58  ;;  %v203_v60 = vmin.f32 %v197_v59, 0.0  ;;  %vm201_vm3 = vcmp.gt.f32.partialorder %v197_v59, 0.0 }
 0x17f   :  { %v206_v61 = vmul.f32 1.442695, %v203_v60 }
 0x181   :  { %835 = vpow2.f32 %v206_v61 }
 0x18a   :  { %v834_v62 = vpop.eup %833 }
 0x18b   :  { %v670_v63 = vadd.f32 -1.0, %v834_v62 }
 0x18d   :  { %v210_v0 = vsel %vm200_vm2, %v192_v53, %v670_v63 }
 0x18e   :  { %v836_v1 = vpop.eup %835  ;;  %766 = vmatprep.mubr.msk.f32.mxu1 %vm221_vm1, %v210_v0 }
 0x18f   :  { %v671_v2 = vadd.f32 -1.0, %v836_v1 }
 0x191   :  { %v211_v3 = vsel %vm201_vm3, %v197_v59, %v671_v2  ;;  %v453_v59 = vlaneseq }
 0x192   :  { %767 = vmatmul.mubr.msk.f32.vlgmr.msra.gmra.mxu1 %vm221_vm1, %v211_v3 }
 0x193   :  { %801 = vmatprep.mubr.f32.mxu1 %v351_v8  ;;  %v454_v62 = vshrl.u32 %v453_v59, 7  ;;  %v477_v63 = vand.u32 127, %v453_v59 }
 0x195   :  { %v480_v2 = vsub.s32 %v477_v63, %v454_v62  ;;  %vm557_vm13 = vcmp.eq.s32.totalorder %v454_v62, 1  ;;  %vm505_vm14 = vcmp.eq.s32.totalorder %v454_v62, 0 }
 0x252   :  { %v1010_v6 = vpop.f32.mrf.mxu1 }
 0x253   :  { %347 = vrot.lane.b32.xlu1 %v1010_v6, %s864_s17 }
 0x254   :  { %v1014_v7 = vpop.f32.mrf.mxu1 }
 0x255   :  { %345 = vrot.lane.b32.xlu0 %v1014_v7, %s864_s17 }
 0x257   :  { %341 = vrot.lane.b32.xlu1 %v1010_v6, %s866_s19 }
 0x259   :  { %339 = vrot.lane.b32.xlu0 %v1014_v7, %s866_s19 }
 0x25b   :  { %335 = vrot.lane.b32.xlu1 %v1010_v6, %s868_s20 }
 0x25d   :  { %333 = vrot.lane.b32.xlu0 %v1014_v7, %s868_s20 }
 0x25f   :  { %329 = vrot.lane.b32.xlu1 %v1010_v6, %s870_s22 }
 0x261   :  { %327 = vrot.lane.b32.xlu0 %v1014_v7, %s870_s22 }
 0x263   :  { %323 = vrot.lane.b32.xlu1 %v1010_v6, %s872_s24 }
 0x265   :  { %321 = vrot.lane.b32.xlu0 %v1014_v7, %s872_s24 }
 0x267   :  { %317 = vrot.lane.b32.xlu1 %v1010_v6, %s874_s26 }
 0x269   :  { %315 = vrot.lane.b32.xlu0 %v1014_v7, %s874_s26 }
 0x26b   :  { %311 = vrot.lane.b32.xlu1 %v1010_v6, %s876_s30 }
 0x26d   :  { %309 = vrot.lane.b32.xlu0 %v1014_v7, %s876_s30 }
 0x26f   :  { %354 = vperm.xlu1 %831, %v963_v4  }
 0x271   :  { %358 = vperm.xlu0 %832, %v968_v5  }
 0x2c5   :  { %v348_v10 = vpop.permute.xlu1 %347 }
 0x2c6   :  { %769 = vmatprep.subr.mxu1 %v348_v10 }
 0x2c7   :  { %770 = vmatpush3.msra.mxu1 %v348_v10  ;;  %v346_v11 = vpop.permute.xlu0 %345 }
 0x2c8   :  { %771 = vmatprep.subr.mxu1 %v346_v11 }
 0x2c9   :  { %v342_v12 = vpop.permute.xlu1 %341  ;;  %772 = vmatpush3.msra.mxu1 %v346_v11 }
 0x2ca   :  { %773 = vmatprep.subr.mxu1 %v342_v12 }
 0x2cb   :  { %774 = vmatpush3.msra.mxu1 %v342_v12  ;;  %v340_v13 = vpop.permute.xlu0 %339 }
 0x2cc   :  { %775 = vmatprep.subr.mxu1 %v340_v13 }
 0x2cd   :  { %v336_v14 = vpop.permute.xlu1 %335  ;;  %776 = vmatpush3.msra.mxu1 %v340_v13 }
 0x2ce   :  { %777 = vmatprep.subr.mxu1 %v336_v14 }
 0x2cf   :  { %778 = vmatpush3.msra.mxu1 %v336_v14  ;;  %v334_v15 = vpop.permute.xlu0 %333 }
 0x2d0   :  { %779 = vmatprep.subr.mxu1 %v334_v15 }
 0x2d1   :  { %v330_v4 = vpop.permute.xlu1 %329  ;;  %780 = vmatpush3.msra.mxu1 %v334_v15 }
 0x2d2   :  { %781 = vmatprep.subr.mxu1 %v330_v4 }
 0x2d3   :  { %782 = vmatpush3.msra.mxu1 %v330_v4  ;;  %v328_v5 = vpop.permute.xlu0 %327 }
 0x2d4   :  { %783 = vmatprep.subr.mxu1 %v328_v5 }
 0x2d5   :  { %v324_v16 = vpop.permute.xlu1 %323  ;;  %784 = vmatpush3.msra.mxu1 %v328_v5 }
 0x2d6   :  { %785 = vmatprep.subr.mxu1 %v324_v16 }
 0x2d7   :  { %786 = vmatpush3.msra.mxu1 %v324_v16  ;;  %v322_v17 = vpop.permute.xlu0 %321 }
 0x2d8   :  { %787 = vmatprep.subr.mxu1 %v322_v17 }
 0x2d9   :  { %v318_v18 = vpop.permute.xlu1 %317  ;;  %788 = vmatpush3.msra.mxu1 %v322_v17 }
 0x2da   :  { %789 = vmatprep.subr.mxu1 %v318_v18 }
 0x2db   :  { %790 = vmatpush3.msra.mxu1 %v318_v18  ;;  %v316_v19 = vpop.permute.xlu0 %315 }
 0x2dc   :  { %791 = vmatprep.subr.mxu1 %v316_v19 }
 0x2dd   :  { %v312_v20 = vpop.permute.xlu1 %311  ;;  %792 = vmatpush3.msra.mxu1 %v316_v19 }
 0x2de   :  { %793 = vmatprep.subr.mxu1 %v312_v20 }
 0x2df   :  { %794 = vmatpush3.msra.mxu1 %v312_v20  ;;  %v310_v21 = vpop.permute.xlu0 %309 }
 0x2e0   :  { %795 = vmatprep.subr.mxu1 %v310_v21 }
 0x2e1   :  { %796 = vmatpush3.msra.mxu1 %v310_v21 }
 0x2e2   :  { %797 = vmatprep.subr.mxu1 %v1010_v6 }
 0x2e3   :  { %798 = vmatpush3.msra.mxu1 %v1010_v6 }
 0x2e4   :  { %799 = vmatprep.subr.mxu1 %v1014_v7 }
 0x2e5   :  { %800 = vmatpush3.msra.mxu1 %v1014_v7 }
 0x2e6   :  { %802 = vmatmul.mubr.f32.vlgmr.msra.gmra.mxu1 %v352_v22 }
 0x2ea   :  { %v355_v25 = vpop.permute.xlu1 %354 }
 0x2ec   :  { %v359_v23 = vpop.permute.xlu0 %358 }
 0x3a6   :  { %v803_v24 = vpop.f32.mrf.mxu1 }
 0x3a7   :  { %v433_v26 = vadd.f32 %v803_v24, %v359_v23  ;;  %v448_v23 = vld [vmem:[%s1081_s1 + $0xd0] sm:$0xff]  ;;  %v880_v24 = vmov 0.0   ;;  %s882_s1 = smov [#allocation2]  }
 0x3a8   :  { %v427_v27 = vpop.f32.mrf.mxu1  ;;  %804 = vmatprep.subr.mxu0 %v880_v24  ;;  %806 = vmatprep.mubr.msk.f32.mxu0 %vm881_vm12, %v880_v24  ;;  %s662_s0 = sshll.u32 %s882_s1, 4  ;;  %s663_s0 = int_to_ptr.vmem [resolvable:$true] %s662_s0 }
 0x3a9   :  { %v439_v28 = vmin.f32 %v433_v26, 0.0  ;;  %v428_v29 = vadd.f32 %v427_v27, %v355_v25  ;;  %vm437_vm4 = vcmp.gt.f32.partialorder %v433_v26, 0.0  ;;  %805 = vmatpush3.msk.msra.mxu0 %vm580_vm11, %v448_v23  ;;  %v568_v25 = vsub.s32 4, %v454_v62  ;;  %s841_s21 = scalar_lea.vmem %s663_s0, 32  ;;  %p846_p1 = scmp.lt.s32.totalorder %s663_s0, %s663_s0 }
 0x3aa   :  { %p842_p0 = scmp.ne.s32.totalorder %s663_s0, %s841_s21  ;;  %p847_p2 = scmp.lt.s32.totalorder %s841_s21, %s841_s21 }
 0x3ab   :  { %v442_v30 = vmul.f32 1.442695, %v439_v28  ;;  %v438_v31 = vmin.f32 %v428_v29, 0.0  ;;  %vm436_vm6 = vcmp.gt.f32.partialorder %v428_v29, 0.0 }
 0x3ac   :  { %p848_p3 = por %p847_p2, %p846_p1 }
 0x3ad   :  { %837 = vpow2.f32 %v442_v30  ;;  %v440_v32 = vmul.f32 1.442695, %v438_v31  ;;  %v569_v30 = vrot.slane %v448_v23, %v568_v25 }
 0x3ae   :  { %p849_p4 = pnand %p848_p3, %p842_p0 }
 0x3af   :  { %839 = vpow2.f32 %v440_v32 }
 0x3ba   :  { %v838_v33 = vpop.eup %837 }
 0x3bb   :  { %v676_v34 = vadd.f32 -1.0, %v838_v33 }
 0x3bc   :  { %v840_v37 = vpop.eup %839 }
 0x3bd   :  { %v447_v38 = vsel %vm437_vm4, %v433_v26, %v676_v34  ;;  %v675_v39 = vadd.f32 -1.0, %v840_v37 }
 0x3be   :  { %v515_v41 = vmul.f32 %v450_v35, %v447_v38  ;;  %v514_v42 = vmul.f32 %v449_v36, %v447_v38  ;;  %v516_v46 = vmul.f32 %v451_v40, %v447_v38  ;;  %v517_v55 = vmul.f32 %v452_v52, %v447_v38 }
 0x3bf   :  { %v446_v43 = vsel %vm436_vm6, %v428_v29, %v675_v39 }
 0x3c0   :  { %v521_v44 = vsel %vm459_vm5, %v515_v41, 0.0  ;;  %v518_v45 = vsel %vm459_vm5, %v514_v42, 0.0  ;;  %v455_v47 = vmul.f32 %v449_v36, %v446_v43  ;;  %v524_v48 = vsel %vm459_vm5, %v516_v46, 0.0 }
 0x3c1   :  { %522 = vadd.xlane.f32.xlu0 %v521_v44  ;;  %519 = vadd.xlane.f32.xlu1 %v518_v45  ;;  %v456_v50 = vmul.f32 %v450_v35, %v446_v43  ;;  %v457_v51 = vmul.f32 %v451_v40, %v446_v43  ;;  %v458_v56 = vmul.f32 %v452_v52, %v446_v43  ;;  %v527_v57 = vsel %vm459_vm5, %v517_v55, 0.0 }
 0x3c2   :  { %v460_v49 = vsel %vm459_vm5, %v455_v47, 0.0  ;;  %v574_v36 = vsub.s32 5, %v454_v62 }
 0x3c3   :  { %v463_v53 = vsel %vm459_vm5, %v456_v50, 0.0  ;;  %v466_v54 = vsel %vm459_vm5, %v457_v51, 0.0  ;;  %v469_v58 = vsel %vm459_vm5, %v458_v56, 0.0 }
 0x3c4   :  { %v575_v37 = vrot.slane %v448_v23, %v574_v36 }
 0x3c5   :  { %525 = vadd.xlane.f32.xlu0 %v524_v48  ;;  %461 = vadd.xlane.f32.xlu1 %v460_v49 }
 0x3c9   :  { %464 = vadd.xlane.f32.xlu0 %v463_v53  ;;  %467 = vadd.xlane.f32.xlu1 %v466_v54 }
 0x3cd   :  { %528 = vadd.xlane.f32.xlu0 %v527_v57  ;;  %470 = vadd.xlane.f32.xlu1 %v469_v58 }
 0x44a   :  { %v523_v60 = vpop.xlane.xlu0 %522  ;;  %v520_v61 = vpop.xlane.xlu1 %519 }
 0x44b   :  { %v541_v7 = vrot.slane %v523_v60, %v480_v2  ;;  %v537_v8 = vrot.slane %v520_v61, %v480_v2 }
 0x44d   :  { %v550_v4 = vsel %vm494_vm7, %v541_v7, %v537_v8 }
 0x44e   :  { %v526_v0 = vpop.xlane.xlu0 %525  ;;  %v462_v1 = vpop.xlane.xlu1 %461 }
 0x44f   :  { %v481_v9 = vrot.slane %v462_v1, %v480_v2  ;;  %v545_v11 = vrot.slane %v526_v0, %v480_v2 }
 0x451   :  { %v551_v17 = vsel %vm496_vm8, %v545_v11, %v550_v4 }
 0x452   :  { %v465_v3 = vpop.xlane.xlu0 %464  ;;  %v468_v6 = vpop.xlane.xlu1 %467 }
 0x453   :  { %v485_v10 = vrot.slane %v465_v3, %v480_v2  ;;  %v489_v12 = vrot.slane %v468_v6, %v480_v2 }
 0x455   :  { %v495_v13 = vsel %vm494_vm7, %v485_v10, %v481_v9 }
 0x456   :  { %v529_v14 = vpop.xlane.xlu0 %528  ;;  %v471_v15 = vpop.xlane.xlu1 %470  ;;  %v497_v18 = vsel %vm496_vm8, %v489_v12, %v495_v13 }
 0x457   :  { %v549_v5 = vrot.slane %v529_v14, %v480_v2  ;;  %v493_v16 = vrot.slane %v471_v15, %v480_v2 }
 0x459   :  { %v552_v19 = vsel %vm498_vm9, %v549_v5, %v551_v17  ;;  %v499_v20 = vsel %vm498_vm9, %v493_v16, %v497_v18 }
 0x45a   :  { %v554_v21 = vsel %vm501_vm10, %v552_v19, 0.0  ;;  %v502_v22 = vsel %vm501_vm10, %v499_v20, 0.0 }
 0x45b   :  { %555 = vadd.xlane.f32.xlu0 %v554_v21  ;;  %503 = vadd.xlane.f32.xlu1 %v502_v22 }
 0x4e4   :  { %v556_v26 = vpop.xlane.xlu0 %555  ;;  %v504_v27 = vpop.xlane.xlu1 %503 }
 0x4e5   :  { %v562_v28 = vrot.slane %v556_v26, %v480_v2  ;;  %v510_v29 = vrot.slane %v504_v27, %v480_v2 }
 0x4e7   :  { %v564_v31 = vsel %vm557_vm13, %v562_v28, 0.0  ;;  %v512_v32 = vsel %vm505_vm14, %v510_v29, 0.0 }
 0x4e8   :  { %v565_v33 = vadd.f32 %v564_v31, %v512_v32 }
 0x4ea   :  { %v570_v34 = vadd.f32 %v569_v30, %v565_v33 }
 0x4ec   :  { %v571_v35 = vmax.f32 %v570_v34, 0.0 }
 0x4ee   :  { %807 = vmatmul.mubr.msk.f32.vlgmr.msra.gmra.mxu0 %vm576_vm15, %v571_v35 }
 0x5ae   :  { %v650_v38 = vpop.f32.mrf.mxu0 }
 0x5af   :  { %v651_v39 = vadd.f32 %v650_v38, %v575_v37 }
 0x5b0   :  { %v808_v40 = vpop.f32.mrf.mxu0 }
 0x5b1   :  { %655 = vst.msk [vmem:[#allocation2] sm:$0x3] %vm654_vm0, %v651_v39 }
 0x5b2   :  { %852 = shalt.err (!%p849_p4)
}
 0x5b3   :  { %665 = dma.vmem_to_hbm [thread:$0]  %s663_s0, 32, %s1083_s3, [#allocation3]  }
 0x5b4   :  { %861 = dma.done.wait [#allocation3], 32  }
 0x5b5   :  { %862 = vsyncadd [#allocation3], 4294967264 }
 0x5b6   :  { %669 = vsyncpa [#allocation3], 1 }

</bundles_post_ra>
